<compile_context>
chip_gen: v7x
topology: tpu7x:2x2x1
jax: 0.10.0
libtpu: 0.0.40
codegen_flags: <defaults>
</compile_context>

<pallas_src>
import math

import jax
import jax.numpy as jnp
from jax.experimental import pallas as pl
from jax.experimental.pallas import tpu as pltpu


def make_positional_encoding(d_model: int, max_len: int = 5000,
                             dtype=jnp.float32) -> jnp.ndarray:
    """Deterministic pe buffer, identical to the PyTorch __init__."""
    assert d_model % 2 == 0, "d_model must be even (as implied by the module)"
    position = jnp.arange(max_len, dtype=jnp.float32)[:, None]             # (L, 1)
    div_term = jnp.exp(jnp.arange(0, d_model, 2, dtype=jnp.float32)
                       * (-math.log(10000.0) / d_model))                   # (D/2,)
    angles = position * div_term                                           # (L, D/2)
    # interleave: even cols = sin, odd cols = cos
    pe = jnp.stack([jnp.sin(angles), jnp.cos(angles)], axis=-1)            # (L, D/2, 2)
    pe = pe.reshape(max_len, d_model)[:, None, :]                          # (L, 1, D)
    return pe.astype(dtype)


def _make_pe_add_kernel(batch: int):
    """Kernel factory: lane-replication factor (batch) is baked in statically."""
    def kernel(x_ref, pe_ref, o_ref):
        # x_ref / o_ref: (TS, batch * d_model);  pe_ref: (TS, d_model)
        pe_tile = pe_ref[...]
        if batch > 1:
            # Replicate along lanes so pe lines up with the flattened
            # (batch, d_model) trailing dims of x.  Pure vreg copies; hidden
            # under the HBM DMAs in this memory-bound kernel.
            pe_tile = jnp.tile(pe_tile, (1, batch))
        o_ref[...] = (x_ref[...] + pe_tile).astype(o_ref.dtype)
        # TODO(synk): dropout with p > 0 would need pltpu.prng_seed +
        # pltpu.stateful_bernoulli; the module default is p=0 (identity).
    return kernel


def _choose_seq_tile(seq_len: int, batch: int, d_model: int, itemsize: int,
                     target_bytes: int = 2 << 20) -> int:
    """Seq tile (multiple of 8) sized so one x block is ~2 MiB.

    Resident VMEM ~= 2 bufs * (x + out + pe) blocks ~= 2*(2 + 2 + 2/B) MiB,
    comfortably inside the default scoped-VMEM limit on v5e / v6e / v7x.
    """
    row_bytes = max(1, batch * d_model * itemsize)
    ts = (target_bytes // row_bytes) // 8 * 8
    ts = max(8, int(ts))
    if ts >= seq_len:
        return seq_len            # single full-extent block; any seq_len allowed
    return ts                     # < seq_len -> multiple of 8 (sublane rule)


def positional_encoding_forward(x: jnp.ndarray, pe: jnp.ndarray,
                                *, seq_tile: int | None = None) -> jnp.ndarray:
    """x: [seq_len, batch, d_model]; pe: [max_len, 1, d_model]."""
    seq_len, batch, d_model = x.shape
    max_len = pe.shape[0]
    assert max_len >= seq_len and pe.shape[2] == d_model

    # Free reshapes (contiguous trailing dims) — no HBM copies.  Cast pe to
    # x.dtype so the in-kernel add/store dtypes match (no-op for f32).
    x2d = x.reshape(seq_len, batch * d_model)
    pe2d = pe.reshape(max_len, d_model).astype(x.dtype)

    itemsize = jnp.dtype(x.dtype).itemsize
    ts = seq_tile if seq_tile is not None else _choose_seq_tile(
        seq_len, batch, d_model, itemsize)
    num_tiles = pl.cdiv(seq_len, ts)

    out2d = pl.pallas_call(
        _make_pe_add_kernel(batch),
        out_shape=jax.ShapeDtypeStruct((seq_len, batch * d_model), x.dtype),
        grid=(num_tiles,),
        in_specs=[
            pl.BlockSpec((ts, batch * d_model), lambda i: (i, 0)),  # x rows
            pl.BlockSpec((ts, d_model), lambda i: (i, 0)),          # pe rows (no slice copy)
        ],
        out_specs=pl.BlockSpec((ts, batch * d_model), lambda i: (i, 0)),
        compiler_params=pltpu.CompilerParams(
            dimension_semantics=("parallel",)),     # megacore sharding on v7x
    )(x2d, pe2d)

    return out2d.reshape(seq_len, batch, d_model)


if __name__ == "__main__":
    d_model, max_len = 32, 64
    pe = make_positional_encoding(d_model, max_len=max_len)

    key = jax.random.PRNGKey(0)
    k1, k2 = jax.random.split(key)

    # Case 1: small shape from the module spec (single full-extent block path).
    seq_len, batch = 8, 2
    x1 = jax.random.normal(k1, (seq_len, batch, d_model), dtype=jnp.float32)
    out1 = jax.block_until_ready(positional_encoding_forward(x1, pe))
    ref1 = x1 + pe[:seq_len]
    assert out1.shape == (seq_len, batch, d_model)
    assert jnp.allclose(out1, ref1, atol=1e-6, rtol=1e-6)

    # Case 2: force a real multi-step grid with a partial last tile (44 % 8 != 0)
    # to exercise the pipelined / masked-edge path.
    seq_len2 = 44
    x2 = jax.random.normal(k2, (seq_len2, batch, d_model), dtype=jnp.float32)
    out2 = jax.block_until_ready(positional_encoding_forward(x2, pe, seq_tile=8))
    ref2 = x2 + pe[:seq_len2]
    assert jnp.allclose(out2, ref2, atol=1e-6, rtol=1e-6)

    print("KERNEL_OK")
</pallas_src>

<mosaic_0001>
module attributes {stable_mosaic.version = 11 : i64} {
  func.func @kernel(%arg0: i32, %arg1: memref<8x64xf32, #tpu.memory_space<vmem>>, %arg2: memref<8x32xf32, #tpu.memory_space<vmem>>, %arg3: memref<8x64xf32, #tpu.memory_space<vmem>>) attributes {dimension_semantics = [#tpu.dimension_semantics<parallel>], iteration_bounds = array<i64: 1>, scalar_prefetch = 0 : i64, scratch_operands = 0 : i64, tpu.core_type = #tpu.core_type<tc>, window_params = [{transform_indices = @transform_0, window_bounds = array<i64: 8, 64>}, {transform_indices = @transform_1, window_bounds = array<i64: 8, 32>}, {transform_indices = @transform_2, window_bounds = array<i64: 8, 64>}]} {
    %c0 = arith.constant 0 : index
    %c0_0 = arith.constant 0 : index
    %0 = vector.load %arg2[%c0, %c0_0] : memref<8x32xf32, #tpu.memory_space<vmem>>, vector<8x32xf32>
    %1 = tpu.concatenate %0, %0 in 1 : vector<8x32xf32>, vector<8x32xf32> -> vector<8x64xf32>
    %c0_1 = arith.constant 0 : index
    %c0_2 = arith.constant 0 : index
    %2 = vector.load %arg1[%c0_1, %c0_2] : memref<8x64xf32, #tpu.memory_space<vmem>>, vector<8x64xf32>
    %3 = arith.addf %2, %1 : vector<8x64xf32>
    %c0_3 = arith.constant 0 : index
    %c0_4 = arith.constant 0 : index
    %4 = vector.load %arg3[%c0_3, %c0_4] : memref<8x64xf32, #tpu.memory_space<vmem>>, vector<8x64xf32>
    tpu.vector_store %arg3[%c0_3, %c0_4], %3 {strides = array<i32>} : memref<8x64xf32, #tpu.memory_space<vmem>>, vector<8x64xf32>,
    return
  }
  func.func @transform_0(%arg0: i32) -> (i32, i32) {
    %c0_i32 = arith.constant 0 : i32
    %c0_i32_0 = arith.constant 0 : i32
    return %arg0, %c0_i32 : i32, i32
  }
  func.func @transform_1(%arg0: i32) -> (i32, i32) {
    %c0_i32 = arith.constant 0 : i32
    %c0_i32_0 = arith.constant 0 : i32
    return %arg0, %c0_i32 : i32, i32
  }
  func.func @transform_2(%arg0: i32) -> (i32, i32) {
    %c0_i32 = arith.constant 0 : i32
    %c0_i32_0 = arith.constant 0 : i32
    return %arg0, %c0_i32 : i32, i32
  }
}

</mosaic_0001>

<bundles_post_ra>
// kernel: tpu_custom_call.1
= control target key start
LH: loop header
LB: loop body
LE: loop exit
PB: predicated region body
PF: predicated region fallthrough
CT: control target
= control target key end

     0   :  { %s98_s0 = inlined_call_operand.vmem [shape: f32[8,64], index: 0, kind: input, shape index: {}]   ;;  %s99_s1 = inlined_call_operand.vmem [shape: f32[64,32], index: 1, kind: input, shape index: {}]   ;;  %s100_s2 = inlined_call_operand.hbm [shape: f32[8,64], index: 2, kind: output, shape index: {}]  }
   0x1   :  { %v12_v0 = vld [vmem:[%s99_s1] sm:$0xff] }
   0x2   :  { %7 = vsyncpa [#allocation3], 0  ;;  %s63_s11 = smov 32   ;;  %vm17_vm0 = vcmask 261120   ;;  %v19_v1 = vld [vmem:[%s98_s0] sm:$0xff]  ;;  %s64_s14 = smov [#allocation2]  }
   0x3   :  { %14 = vrot.lane.b32.xlu0 %v12_v0, %s63_s11  ;;  %s29_s15 = sshll.u32 %s64_s14, 4  ;;  %vm21_vm1 = vcmask 523264   ;;  %s30_s15 = int_to_ptr.vmem [resolvable:$true] %s29_s15 }
   0x4   :  { %s39_s16 = scalar_lea.vmem %s30_s15, 128  ;;  %p44_p1 = scmp.lt.s32.totalorder %s30_s15, %s30_s15 }
   0x5   :  { %p40_p0 = scmp.ne.s32.totalorder %s30_s15, %s39_s16  ;;  %p45_p2 = scmp.lt.s32.totalorder %s39_s16, %s39_s16 }
   0x7   :  { %p46_p3 = por %p45_p2, %p44_p1 }
   0x9   :  { %p47_p4 = pnand %p46_p3, %p40_p0 }
  0x75   :  { %v15_v2 = vpop.permute.xlu0 %14 }
  0x76   :  { %v18_v3 = vsel %vm17_vm0, %v12_v0, %v15_v2 }
  0x77   :  { %v20_v4 = vadd.f32 %v19_v1, %v18_v3 }
  0x79   :  { %22 = vst.msk [vmem:[#allocation2] sm:$0xff] %vm21_vm1, %v20_v4 }
  0x7a   :  { %50 = shalt.err (!%p47_p4)
}
  0x7b   :  { %s51_s18 = scalar_lea.hbm %s100_s2, 128 }
  0x7c   :  { %p52_p5 = scmp.ne.s32.totalorder %s100_s2, %s51_s18  ;;  %p55_p6 = scmp.lt.u32.totalorder %s51_s18, %s100_s2 }
  0x7e   :  { %p57_p7 = pnand %p55_p6, %p52_p5 }
  0x80   :  { %60 = shalt.err (!%p57_p7)
}
  0x81   :  { %32 = dma.vmem_to_hbm [thread:$0]  %s30_s15, 128, %s100_s2, [#allocation3]  }
  0x82   :  { %61 = dma.done.wait [#allocation3], 128  }
  0x83   :  { %62 = vsyncadd [#allocation3], 4294967168 }
  0x84   :  { %36 = vsyncpa [#allocation3], 1 }

</bundles_post_ra>
